<compile_context>
chip_gen: v7x
topology: tpu7x:2x2x1
jax: 0.10.0
libtpu: 0.0.40
codegen_flags: <defaults>
</compile_context>

<pallas_src>
import jax
import jax.numpy as jnp
from jax.experimental import pallas as pl
from jax.experimental.pallas import tpu as pltpu


def _bin_kernel(gamma_ref, beta_ref, rho_ref, eps_ref, x_ref, o_ref):
    # x_ref: (N, Cb, HW) block of channels for this grid step.
    x = x_ref[...].astype(jnp.float32)
    n, cb, hw = x.shape
    eps = eps_ref[0]

    # --- single streaming pass over the block: sums and sums of squares ---
    inst_sum = jnp.sum(x, axis=-1, keepdims=True)              # (N, Cb, 1)
    inst_sumsq = jnp.sum(x * x, axis=-1, keepdims=True)        # (N, Cb, 1)
    batch_sum = jnp.sum(inst_sum, axis=0, keepdims=True)       # (1, Cb, 1)
    batch_sumsq = jnp.sum(inst_sumsq, axis=0, keepdims=True)   # (1, Cb, 1)

    hw_f = jnp.float32(hw)
    nhw_f = jnp.float32(n * hw)

    # torch.var default is unbiased (ddof=1) -> divide by (count - 1).
    inst_mean = inst_sum / hw_f
    inst_var = (inst_sumsq - inst_sum * inst_mean) / jnp.float32(hw - 1)
    batch_mean = batch_sum / nhw_f
    batch_var = (batch_sumsq - batch_sum * batch_mean) / jnp.float32(n * hw - 1)

    # rsqrt on tiny (N,Cb,1)/(1,Cb,1) values -> EUP, essentially free.
    rs_i = jax.lax.rsqrt(inst_var + eps)                       # (N, Cb, 1)
    rs_b = jax.lax.rsqrt(batch_var + eps)                      # (1, Cb, 1)

    gamma = gamma_ref[...].astype(jnp.float32)                 # (1, Cb, 1)
    beta = beta_ref[...].astype(jnp.float32)                   # (1, Cb, 1)
    rho = rho_ref[...].astype(jnp.float32)                     # (1, Cb, 1)

    # Fused blend + affine:  out = a * x + b   (one FMA per element)
    w_b = rho * rs_b                                           # (1, Cb, 1)
    w_i = (1.0 - rho) * rs_i                                   # (N, Cb, 1)
    a = gamma * (w_b + w_i)                                    # (N, Cb, 1)
    b = beta - gamma * (w_b * batch_mean + w_i * inst_mean)    # (N, Cb, 1)

    o_ref[...] = (a * x + b).astype(o_ref.dtype)


def _pick_channel_block(N, C, HW, itemsize):
    """Channels per grid step: big enough to amortize per-step overhead,
    small enough that double-buffered in/out blocks fit VMEM on every
    generation (v7x has only 64 MiB physical)."""
    budget = 48 * 1024 * 1024
    per_channel = N * HW * itemsize * 6  # in+out double-buffered + temp headroom
    if C >= 8 and C % 8 == 0:
        cb = 8
        while (cb * 2) <= C and C % (cb * 2) == 0 and per_channel * cb * 2 <= budget:
            cb *= 2
        # TODO(synk): for very large N*H*W per channel, add an HW-reduction grid
        # axis with sum/sumsq accumulators instead of keeping the full slab resident.
        return cb
    # Small / odd C: one block over all channels (block dim == full dim is legal).
    return C


def batch_instance_norm(x, gamma, beta, rho, eps):
    """x: (N, C, H, W); gamma/beta/rho: (1, C, 1, 1); eps: (1,)."""
    N, C, H, W = x.shape
    HW = H * W

    # Free reshape: H, W are contiguous, so no transpose / extra HBM traffic.
    x3 = x.reshape(N, C, HW)

    gamma_c = gamma.reshape(1, C, 1).astype(jnp.float32)
    beta_c = beta.reshape(1, C, 1).astype(jnp.float32)
    rho_c = rho.reshape(1, C, 1).astype(jnp.float32)
    eps_c = eps.reshape(1).astype(jnp.float32)

    Cb = _pick_channel_block(N, C, HW, x.dtype.itemsize)
    grid = (C // Cb,)

    block_bytes = N * Cb * HW * x.dtype.itemsize
    # Limit <= 64 MiB so it is valid on v7x while still allowing large blocks
    # to hit the HBM roofline on v5e/v6e.
    vmem_limit = int(min(64 * 1024 * 1024,
                         max(32 * 1024 * 1024, 6 * block_bytes)))

    param_spec = pl.BlockSpec((1, Cb, 1), lambda c: (0, c, 0))
    smem_spec = pl.BlockSpec(memory_space=pltpu.MemorySpace.SMEM)

    out3 = pl.pallas_call(
        _bin_kernel,
        out_shape=jax.ShapeDtypeStruct((N, C, HW), x.dtype),
        grid_spec=pl.GridSpec(
            grid=grid,
            in_specs=[
                param_spec,  # gamma
                param_spec,  # beta
                param_spec,  # rho
                smem_spec,   # eps
                pl.BlockSpec((N, Cb, HW), lambda c: (0, c, 0)),
            ],
            out_specs=pl.BlockSpec((N, Cb, HW), lambda c: (0, c, 0)),
        ),
        compiler_params=pltpu.CompilerParams(
            dimension_semantics=("parallel",),
            vmem_limit_bytes=vmem_limit,
        ),
    )(gamma_c, beta_c, rho_c, eps_c, x3)

    return out3.reshape(N, C, H, W)


def _reference(x, gamma, beta, rho, eps):
    batch_mean = jnp.mean(x, axis=(0, 2, 3), keepdims=True)
    batch_var = jnp.var(x, axis=(0, 2, 3), keepdims=True, ddof=1)
    x_batch = (x - batch_mean) / jnp.sqrt(batch_var + eps)
    inst_mean = jnp.mean(x, axis=(2, 3), keepdims=True)
    inst_var = jnp.var(x, axis=(2, 3), keepdims=True, ddof=1)
    x_inst = (x - inst_mean) / jnp.sqrt(inst_var + eps)
    x_norm = rho * x_batch + (1.0 - rho) * x_inst
    return x_norm * gamma + beta


if __name__ == "__main__":
    key = jax.random.PRNGKey(0)
    N, C, H, W = 2, 4, 16, 16

    x = jax.random.normal(key, (N, C, H, W), dtype=jnp.float32)

    # Deterministic parameter init mirroring the PyTorch module's __init__.
    gamma = jnp.ones((1, C, 1, 1), dtype=jnp.float32)
    beta = jnp.zeros((1, C, 1, 1), dtype=jnp.float32)
    rho = jnp.full((1, C, 1, 1), 0.5, dtype=jnp.float32)
    eps = jnp.array([1e-5], dtype=jnp.float32)

    out = batch_instance_norm(x, gamma, beta, rho, eps)
    out = jax.block_until_ready(out)

    ref = _reference(x, gamma, beta, rho, jnp.float32(1e-5))
    assert out.shape == (N, C, H, W)
    assert jnp.allclose(out, ref, atol=1e-4, rtol=1e-4), "mismatch vs reference"

    print("KERNEL_OK")
</pallas_src>

<mosaic_0001>
module attributes {stable_mosaic.version = 11 : i64} {
  func.func @_bin_kernel(%arg0: i32, %arg1: memref<1x4x1xf32, #tpu.memory_space<vmem>>, %arg2: memref<1x4x1xf32, #tpu.memory_space<vmem>>, %arg3: memref<1x4x1xf32, #tpu.memory_space<vmem>>, %arg4: memref<1xf32, #tpu.memory_space<smem>>, %arg5: memref<2x4x256xf32, #tpu.memory_space<vmem>>, %arg6: memref<2x4x256xf32, #tpu.memory_space<vmem>>) attributes {dimension_semantics = [#tpu.dimension_semantics<parallel>], iteration_bounds = array<i64: 1>, scalar_prefetch = 0 : i64, scratch_operands = 0 : i64, tpu.core_type = #tpu.core_type<tc>, window_params = [{transform_indices = @transform_0, window_bounds = array<i64: 1, 4, 1>}, {transform_indices = @transform_1, window_bounds = array<i64: 1, 4, 1>}, {transform_indices = @transform_2, window_bounds = array<i64: 1, 4, 1>}, {transform_indices = @transform_3, window_bounds = array<i64: 1>}, {transform_indices = @transform_4, window_bounds = array<i64: 2, 4, 256>}, {transform_indices = @transform_5, window_bounds = array<i64: 2, 4, 256>}]} {
    %c0 = arith.constant 0 : index
    %c0_0 = arith.constant 0 : index
    %c0_1 = arith.constant 0 : index
    %0 = vector.load %arg5[%c0, %c0_0, %c0_1] : memref<2x4x256xf32, #tpu.memory_space<vmem>>, vector<2x4x256xf32>
    %c0_2 = arith.constant 0 : index
    %1 = memref.load %arg4[%c0_2] : memref<1xf32, #tpu.memory_space<smem>>
    %cst = arith.constant dense<0.000000e+00> : vector<2x4xf32>
    %2 = vector.multi_reduction <add>, %0, %cst [2] : vector<2x4x256xf32> to vector<2x4xf32>
    %3 = vector.shape_cast %2 : vector<2x4xf32> to vector<2x4x1xf32>
    %4 = arith.mulf %0, %0 : vector<2x4x256xf32>
    %cst_3 = arith.constant dense<0.000000e+00> : vector<2x4xf32>
    %5 = vector.multi_reduction <add>, %4, %cst_3 [2] : vector<2x4x256xf32> to vector<2x4xf32>
    %6 = vector.shape_cast %5 : vector<2x4xf32> to vector<2x4x1xf32>
    %cst_4 = arith.constant dense<0.000000e+00> : vector<4x1xf32>
    %7 = vector.multi_reduction <add>, %3, %cst_4 [0] : vector<2x4x1xf32> to vector<4x1xf32>
    %8 = vector.shape_cast %7 : vector<4x1xf32> to vector<1x4x1xf32>
    %cst_5 = arith.constant dense<0.000000e+00> : vector<4x1xf32>
    %9 = vector.multi_reduction <add>, %6, %cst_5 [0] : vector<2x4x1xf32> to vector<4x1xf32>
    %10 = vector.shape_cast %9 : vector<4x1xf32> to vector<1x4x1xf32>
    %cst_6 = arith.constant 2.560000e+02 : f32
    %11 = vector.broadcast %cst_6 : f32 to vector<2x4x1xf32>
    %12 = arith.divf %3, %11 : vector<2x4x1xf32>
    %13 = arith.mulf %3, %12 : vector<2x4x1xf32>
    %14 = arith.subf %6, %13 : vector<2x4x1xf32>
    %cst_7 = arith.constant 2.550000e+02 : f32
    %15 = vector.broadcast %cst_7 : f32 to vector<2x4x1xf32>
    %16 = arith.divf %14, %15 : vector<2x4x1xf32>
    %cst_8 = arith.constant 5.120000e+02 : f32
    %17 = vector.broadcast %cst_8 : f32 to vector<1x4x1xf32>
    %18 = arith.divf %8, %17 : vector<1x4x1xf32>
    %19 = arith.mulf %8, %18 : vector<1x4x1xf32>
    %20 = arith.subf %10, %19 : vector<1x4x1xf32>
    %cst_9 = arith.constant 5.110000e+02 : f32
    %21 = vector.broadcast %cst_9 : f32 to vector<1x4x1xf32>
    %22 = arith.divf %20, %21 : vector<1x4x1xf32>
    %23 = vector.broadcast %1 : f32 to vector<2x4x1xf32>
    %24 = arith.addf %16, %23 : vector<2x4x1xf32>
    %25 = math.rsqrt %24 : vector<2x4x1xf32>
    %26 = vector.broadcast %1 : f32 to vector<1x4x1xf32>
    %27 = arith.addf %22, %26 : vector<1x4x1xf32>
    %28 = math.rsqrt %27 : vector<1x4x1xf32>
    %c0_10 = arith.constant 0 : index
    %c0_11 = arith.constant 0 : index
    %c0_12 = arith.constant 0 : index
    %29 = vector.load %arg1[%c0_10, %c0_11, %c0_12] : memref<1x4x1xf32, #tpu.memory_space<vmem>>, vector<1x4x1xf32>
    %c0_13 = arith.constant 0 : index
    %c0_14 = arith.constant 0 : index
    %c0_15 = arith.constant 0 : index
    %30 = vector.load %arg2[%c0_13, %c0_14, %c0_15] : memref<1x4x1xf32, #tpu.memory_space<vmem>>, vector<1x4x1xf32>
    %c0_16 = arith.constant 0 : index
    %c0_17 = arith.constant 0 : index
    %c0_18 = arith.constant 0 : index
    %31 = vector.load %arg3[%c0_16, %c0_17, %c0_18] : memref<1x4x1xf32, #tpu.memory_space<vmem>>, vector<1x4x1xf32>
    %32 = arith.mulf %31, %28 : vector<1x4x1xf32>
    %cst_19 = arith.constant 1.000000e+00 : f32
    %33 = vector.broadcast %cst_19 : f32 to vector<1x4x1xf32>
    %34 = arith.subf %33, %31 : vector<1x4x1xf32>
    %35 = vector.broadcast %34 : vector<1x4x1xf32> to vector<2x4x1xf32>
    %36 = arith.mulf %35, %25 : vector<2x4x1xf32>
    %37 = vector.broadcast %32 : vector<1x4x1xf32> to vector<2x4x1xf32>
    %38 = arith.addf %37, %36 : vector<2x4x1xf32>
    %39 = vector.broadcast %29 : vector<1x4x1xf32> to vector<2x4x1xf32>
    %40 = arith.mulf %39, %38 : vector<2x4x1xf32>
    %41 = arith.mulf %32, %18 : vector<1x4x1xf32>
    %42 = arith.mulf %36, %12 : vector<2x4x1xf32>
    %43 = vector.broadcast %41 : vector<1x4x1xf32> to vector<2x4x1xf32>
    %44 = arith.addf %43, %42 : vector<2x4x1xf32>
    %45 = vector.broadcast %29 : vector<1x4x1xf32> to vector<2x4x1xf32>
    %46 = arith.mulf %45, %44 : vector<2x4x1xf32>
    %47 = vector.broadcast %30 : vector<1x4x1xf32> to vector<2x4x1xf32>
    %48 = arith.subf %47, %46 : vector<2x4x1xf32>
    %49 = vector.broadcast %40 : vector<2x4x1xf32> to vector<2x4x256xf32>
    %50 = arith.mulf %49, %0 : vector<2x4x256xf32>
    %51 = vector.broadcast %48 : vector<2x4x1xf32> to vector<2x4x256xf32>
    %52 = arith.addf %50, %51 : vector<2x4x256xf32>
    %c0_20 = arith.constant 0 : index
    %c0_21 = arith.constant 0 : index
    %c0_22 = arith.constant 0 : index
    %53 = vector.load %arg6[%c0_20, %c0_21, %c0_22] : memref<2x4x256xf32, #tpu.memory_space<vmem>>, vector<2x4x256xf32>
    tpu.vector_store %arg6[%c0_20, %c0_21, %c0_22], %52 {strides = array<i32>} : memref<2x4x256xf32, #tpu.memory_space<vmem>>, vector<2x4x256xf32>,
    return
  }
  func.func @transform_0(%arg0: i32) -> (i32, i32, i32) {
    %c0_i32 = arith.constant 0 : i32
    %c0_i32_0 = arith.constant 0 : i32
    %c0_i32_1 = arith.constant 0 : i32
    return %c0_i32, %arg0, %c0_i32_0 : i32, i32, i32
  }
  func.func @transform_1(%arg0: i32) -> (i32, i32, i32) {
    %c0_i32 = arith.constant 0 : i32
    %c0_i32_0 = arith.constant 0 : i32
    %c0_i32_1 = arith.constant 0 : i32
    return %c0_i32, %arg0, %c0_i32_0 : i32, i32, i32
  }
  func.func @transform_2(%arg0: i32) -> (i32, i32, i32) {
    %c0_i32 = arith.constant 0 : i32
    %c0_i32_0 = arith.constant 0 : i32
    %c0_i32_1 = arith.constant 0 : i32
    return %c0_i32, %arg0, %c0_i32_0 : i32, i32, i32
  }
  func.func @transform_3(%arg0: i32) -> i32 {
    %c0_i32 = arith.constant 0 : i32
    %c0_i32_0 = arith.constant 0 : i32
    return %c0_i32 : i32
  }
  func.func @transform_4(%arg0: i32) -> (i32, i32, i32) {
    %c0_i32 = arith.constant 0 : i32
    %c0_i32_0 = arith.constant 0 : i32
    %c0_i32_1 = arith.constant 0 : i32
    return %c0_i32, %arg0, %c0_i32_0 : i32, i32, i32
  }
  func.func @transform_5(%arg0: i32) -> (i32, i32, i32) {
    %c0_i32 = arith.constant 0 : i32
    %c0_i32_0 = arith.constant 0 : i32
    %c0_i32_1 = arith.constant 0 : i32
    return %c0_i32, %arg0, %c0_i32_0 : i32, i32, i32
  }
}

</mosaic_0001>

<bundles_post_ra>
// kernel: tpu_custom_call.1
= control target key start
LH: loop header
LB: loop body
LE: loop exit
PB: predicated region body
PF: predicated region fallthrough
CT: control target
= control target key end

     0   :  { %vm31_vm0 = vcmask 1043456   ;;  %s301_s0 = inlined_call_operand.vmem [shape: f32[1,4,1], index: 0, kind: input, shape index: {}]   ;;  %s302_s1 = inlined_call_operand.vmem [shape: f32[1,4,1], index: 1, kind: input, shape index: {}]   ;;  %s303_s2 = inlined_call_operand.vmem [shape: f32[1,4,1], index: 2, kind: input, shape index: {}]   ;;  %s304_s3 = inlined_call_operand.<no memory space> [shape: f32[1], index: 3, kind: input, shape index: {}]   ;;  %s305_s4 = inlined_call_operand.vmem [shape: f32[2,4,256], index: 4, kind: input, shape index: {}]   ;;  %s306_s5 = inlined_call_operand.hbm [shape: f32[2,4,256], index: 5, kind: output, shape index: {}]  }
   0x1   :  { %v238_v0 = vld [vmem:[%s305_s4] sm:$0xff]  ;;  %v243_v1 = vld [vmem:[%s305_s4 + $0x8] sm:$0xff] }
   0x2   :  { %11 = vsyncpa [#allocation4], 0  ;;  %v247_v2 = vcombine.high %v238_v0, %v238_v0  ;;  %v32_v3 = vsel %vm31_vm0, %v238_v0, 0.0  ;;  %v42_v4 = vmul.f32 %v238_v0, %v238_v0  ;;  %v255_v5 = vcombine.high %v243_v1, %v243_v1  ;;  %v91_v47 = vld [vmem:[%s303_s2] sm:$0xf] }
   0x3   :  { %v37_v6 = vsel %vm31_vm0, %v243_v1, 0.0  ;;  %v43_v7 = vmul.f32 %v243_v1, %v243_v1  ;;  %v201_v20 = vmov 0   ;;  %v82_v30 = vstv %s304_s3  ;;  %v89_v55 = vld [vmem:[%s301_s0] sm:$0xf]  ;;  %s202_s0 = smov [#allocation3]  }
   0x4   :  { %v33_v8 = vsel %vm31_vm0, %v247_v2, 0.0  ;;  %v46_v9 = vcombine.high %v42_v4, %v42_v4  ;;  %v50_v10 = vsel %vm31_vm0, %v42_v4, 0.0  ;;  %v38_v11 = vsel %vm31_vm0, %v255_v5, 0.0  ;;  %168 = vset.pattern.permute.xlu1 %v201_v20  ;;  %167 = vset.pattern.permute.xlu0 %v201_v20  ;;  %v90_v4 = vld [vmem:[%s302_s1] sm:$0xf]  ;;  %s152_s1 = sshll.u32 %s202_s0, 4  ;;  %s153_s1 = int_to_ptr.vmem [resolvable:$true] %s152_s1 }
   0x5   :  { %v34_v12 = vadd.f32 %v33_v8, %v32_v3  ;;  %v47_v13 = vcombine.high %v43_v7, %v43_v7  ;;  %v55_v15 = vsel %vm31_vm0, %v43_v7, 0.0  ;;  %v39_v17 = vadd.f32 %v38_v11, %v37_v6  ;;  %s177_s27 = scalar_lea.vmem %s153_s1, 256  ;;  %p182_p1 = scmp.lt.s32.totalorder %s153_s1, %s153_s1 }
   0x6   :  { %v51_v14 = vsel %vm31_vm0, %v46_v9, 0.0  ;;  %v93_v48 = vsub.f32 1.0, %v91_v47  ;;  %p178_p0 = scmp.ne.s32.totalorder %s153_s1, %s177_s27  ;;  %p183_p2 = scmp.lt.s32.totalorder %s177_s27, %s177_s27 }
   0x7   :  { %35 = vadd.xlane.f32.xlu0 %v34_v12  ;;  %v52_v16 = vadd.f32 %v51_v14, %v50_v10  ;;  %v56_v18 = vsel %vm31_vm0, %v47_v13, 0.0 }
   0x8   :  { %v57_v19 = vadd.f32 %v56_v18, %v55_v15  ;;  %p184_p3 = por %p183_p2, %p182_p1 }
   0x9   :  { %53 = vadd.xlane.f32.xlu1 %v52_v16 }
   0xa   :  { %p185_p4 = pnand %p184_p3, %p178_p0 }
   0xb   :  { %40 = vadd.xlane.f32.xlu0 %v39_v17 }
   0xd   :  { %58 = vadd.xlane.f32.xlu1 %v57_v19 }
  0x94   :  { %v36_v21 = vpop.xlane.xlu0 %35 }
  0x95   :  { %v67_v22 = vmul.f32 0.00390625, %v36_v21  ;;  %v60_v26 = vsel %vm31_vm0, %v36_v21, 0.0 }
  0x96   :  { %v54_v23 = vpop.xlane.xlu1 %53 }
  0x97   :  { %v69_v24 = vmul.f32 %v67_v22, %v36_v21  ;;  %v63_v37 = vsel %vm31_vm0, %v54_v23, 0.0 }
  0x98   :  { %v41_v25 = vpop.xlane.xlu0 %40 }
  0x99   :  { %v71_v27 = vsub.f32 %v54_v23, %v69_v24  ;;  %v61_v28 = vsel %vm31_vm0, %v41_v25, 0.0  ;;  %v68_v29 = vmul.f32 0.00390625, %v41_v25 }
  0x9a   :  { %v62_v31 = vadd.f32 %v61_v28, %v60_v26  ;;  %v59_v32 = vpop.xlane.xlu1 %58 }
  0x9b   :  { %v74_v33 = vmul.f32 0.003921569, %v71_v27  ;;  %v70_v34 = vmul.f32 %v68_v29, %v41_v25  ;;  %v64_v35 = vsel %vm31_vm0, %v59_v32, 0.0 }
  0x9c   :  { %v77_v36 = vmul.f32 0.001953125, %v62_v31  ;;  %v65_v41 = vadd.f32 %v64_v35, %v63_v37 }
  0x9d   :  { %v83_v38 = vadd.f32 %v82_v30, %v74_v33  ;;  %v72_v39 = vsub.f32 %v59_v32, %v70_v34 }
  0x9e   :  { %v78_v40 = vmul.f32 %v77_v36, %v62_v31 }
  0x9f   :  { %v75_v42 = vmul.f32 0.003921569, %v72_v39  ;;  %171 = vrsqrt.f32 %v83_v38 }
  0xa0   :  { %v79_v43 = vsub.f32 %v65_v41, %v78_v40 }
  0xa1   :  { %v84_v44 = vadd.f32 %v82_v30, %v75_v42 }
  0xa2   :  { %v81_v45 = vmul.f32 0.0019569471, %v79_v43 }
  0xa3   :  { %173 = vrsqrt.f32 %v84_v44 }
  0xa4   :  { %v87_v46 = vadd.f32 %v82_v30, %v81_v45 }
  0xa6   :  { %175 = vrsqrt.f32 %v87_v46 }
  0xa9   :  { %v172_v49 = vpop.eup %171 }
  0xaa   :  { %v94_v51 = vmul.f32 %v172_v49, %v93_v48 }
  0xac   :  { %v101_v56 = vmul.f32 %v94_v51, %v67_v22 }
  0xad   :  { %v174_v50 = vpop.eup %173 }
  0xae   :  { %v95_v52 = vmul.f32 %v174_v50, %v93_v48 }
  0xb0   :  { %v176_v53 = vpop.eup %175  ;;  %v102_v60 = vmul.f32 %v95_v52, %v68_v29 }
  0xb1   :  { %v92_v54 = vmul.f32 %v176_v53, %v91_v47 }
  0xb3   :  { %v97_v57 = vadd.f32 %v95_v52, %v92_v54  ;;  %v96_v58 = vadd.f32 %v94_v51, %v92_v54  ;;  %v100_v59 = vmul.f32 %v92_v54, %v77_v36 }
  0xb5   :  { %v99_v61 = vmul.f32 %v97_v57, %v89_v55  ;;  %v98_v62 = vmul.f32 %v96_v58, %v89_v55  ;;  %v103_v63 = vadd.f32 %v101_v56, %v100_v59  ;;  %v104_v3 = vadd.f32 %v102_v60, %v100_v59 }
  0xb7   :  { %116 = vperm.xlu1 %168, %v99_v61   ;;  %111 = vperm.xlu0 %167, %v98_v62   ;;  %v105_v6 = vmul.f32 %v103_v63, %v89_v55  ;;  %v106_v8 = vmul.f32 %v104_v3, %v89_v55 }
  0xb9   :  { %v107_v7 = vsub.f32 %v90_v4, %v105_v6  ;;  %v108_v9 = vsub.f32 %v90_v4, %v106_v8 }
  0xbb   :  { %125 = vperm.xlu1 %168, %v107_v7  }
  0xbf   :  { %130 = vperm.xlu1 %168, %v108_v9  }
 0x136   :  { %v117_v10 = vpop.permute.xlu1 %116  ;;  %v112_v11 = vpop.permute.xlu0 %111 }
 0x137   :  { %v119_v12 = vmul.f32 %v112_v11, %v238_v0  ;;  %v120_v13 = vmul.f32 %v112_v11, %v247_v2  ;;  %v121_v17 = vmul.f32 %v117_v10, %v243_v1  ;;  %v122_v18 = vmul.f32 %v117_v10, %v255_v5 }
 0x13a   :  { %v126_v14 = vpop.permute.xlu1 %125 }
 0x13b   :  { %v133_v15 = vadd.f32 %v126_v14, %v119_v12  ;;  %v134_v16 = vadd.f32 %v126_v14, %v120_v13 }
 0x13d   :  { %v141_v19 = vcombine.low %v133_v15, %v134_v16 }
 0x13e   :  { %v131_v20 = vpop.permute.xlu1 %130 }
 0x13f   :  { %145 = vst [vmem:[#allocation3] sm:$0xff] %v141_v19  ;;  %v135_v21 = vadd.f32 %v131_v20, %v121_v17  ;;  %v136_v22 = vadd.f32 %v131_v20, %v122_v18 }
 0x141   :  { %v142_v23 = vcombine.low %v135_v21, %v136_v22 }
 0x143   :  { %146 = vst [vmem:[#allocation3 + $0x8] sm:$0xff] %v142_v23 }
 0x144   :  { %188 = shalt.err (!%p185_p4)
}
 0x145   :  { %s189_s30 = scalar_lea.hbm %s306_s5, 256 }
 0x146   :  { %p190_p5 = scmp.ne.s32.totalorder %s306_s5, %s189_s30  ;;  %p193_p6 = scmp.lt.u32.totalorder %s189_s30, %s306_s5 }
 0x148   :  { %p195_p7 = pnand %p193_p6, %p190_p5 }
 0x14a   :  { %198 = shalt.err (!%p195_p7)
}
 0x14b   :  { %s203_s10 = smov 128   ;;  %s204_s11 = smov 8  }
 0x14c   :  { %158 = dma.vmem_to_hbm [thread:$0]  %s153_s1, 256, %s306_s5, [#allocation4], %s203_s10, %s203_s10, %s204_s11  }
 0x14d   :  { %199 = dma.done.wait [#allocation4], 256  }
 0x14e   :  { %200 = vsyncadd [#allocation4], 4294967040 }
 0x14f   :  { %162 = vsyncpa [#allocation4], 1 }

</bundles_post_ra>
